<compile_context>
chip_gen: v7x
topology: tpu7x:2x2x1
jax: 0.10.0
libtpu: 0.0.40
codegen_flags: <defaults>
</compile_context>

<pallas_src>
import functools

import jax
import jax.numpy as jnp
from jax import lax
from jax.experimental import pallas as pl
from jax.experimental.pallas import tpu as pltpu


def _flash_attention_kernel(xq_ref, xkv_ref, wq_ref, wkv_ref, o_ref,
                            q_sc, m_sc, l_sc, acc_sc, *, d_out_p):
    ki = pl.program_id(2)
    nk = pl.num_programs(2)

    @pl.when(ki == 0)
    def _init():
        # Project this query tile once per (batch, q-tile).  The 1/sqrt(d_out)
        # scale is already folded into wq on the host.
        q_sc[...] = jnp.dot(
            xq_ref[0], wq_ref[...], preferred_element_type=jnp.float32
        ).astype(q_sc.dtype)
        m_sc[...] = jnp.full_like(m_sc, -jnp.inf)
        l_sc[...] = jnp.zeros_like(l_sc)
        acc_sc[...] = jnp.zeros_like(acc_sc)

    # Fused K/V projection: one (tk, d_in) @ (d_in, 2*d_out_p) matmul per kv tile.
    kv = jnp.dot(xkv_ref[0], wkv_ref[...], preferred_element_type=jnp.float32)
    k = kv[:, :d_out_p].astype(q_sc.dtype)
    v = kv[:, d_out_p:].astype(q_sc.dtype)

    # scores = q @ k^T without materializing a transpose (contract last dims).
    s = lax.dot_general(q_sc[...], k, (((1,), (1,)), ((), ())),
                        preferred_element_type=jnp.float32)        # (tq, tk) f32

    # Online softmax.  NO causal mask (faithful to the reference, whose
    # masked_fill result is discarded).  Softmax math stays in f32.
    m_prev = m_sc[...]
    m_new = jnp.maximum(m_prev, jnp.max(s, axis=-1, keepdims=True))
    alpha = jnp.exp(m_prev - m_new)
    p = jnp.exp(s - m_new)
    l_sc[...] = alpha * l_sc[...] + jnp.sum(p, axis=-1, keepdims=True)
    acc_sc[...] = alpha * acc_sc[...] + jnp.dot(
        p.astype(v.dtype), v, preferred_element_type=jnp.float32)
    m_sc[...] = m_new

    # Dropout: identity (eval mode).
    @pl.when(ki == nk - 1)
    def _finalize():
        l = l_sc[...]
        r = pl.reciprocal(l, approx=True)      # EUP slot, ~free
        r = r * (2.0 - l * r)                  # one Newton step -> near-exact
        o_ref[0] = (acc_sc[...] * r).astype(o_ref.dtype)


def _pick_tile(total, target):
    """Largest multiple-of-8 tile <= target that divides `total` (else full extent)."""
    if total <= target:
        return total
    for cand in range(target, 7, -8):
        if total % cand == 0:
            return cand
    return total


def causal_attention(x, w_query, w_key, w_value, *,
                     compute_dtype=None, q_tile=128, kv_tile=512):
    """x: (B, T, d_in); w_*: (d_out, d_in) as in nn.Linear. Returns (B, T, d_out)."""
    B, T, d_in = x.shape
    d_out = w_query.shape[0]
    out_dtype = x.dtype
    if compute_dtype is None:
        compute_dtype = x.dtype

    # Pad head dim to a multiple of 128 so stores are lane-dense.  Padding
    # columns of the weights are zero -> exact zeros in q/k/v -> exact result.
    d_out_p = ((d_out + 127) // 128) * 128
    scale = 1.0 / (float(d_out) ** 0.5)   # module's d_out, not the padded one

    def prep(w):  # (d_out, d_in) -> (d_in, d_out_p), transposed + zero-padded
        wt = w.T.astype(jnp.float32)
        if d_out_p != d_out:
            wt = jnp.pad(wt, ((0, 0), (0, d_out_p - d_out)))
        return wt

    wq_s = (prep(w_query) * scale).astype(compute_dtype)          # scale folded in
    wkv = jnp.concatenate([prep(w_key), prep(w_value)], axis=1).astype(compute_dtype)
    xc = x.astype(compute_dtype)

    tq = _pick_tile(T, q_tile)
    tk = _pick_tile(T, kv_tile)
    nq, nk = T // tq, T // tk

    kernel = functools.partial(_flash_attention_kernel, d_out_p=d_out_p)

    out = pl.pallas_call(
        kernel,
        out_shape=jax.ShapeDtypeStruct((B, T, d_out_p), out_dtype),
        grid_spec=pltpu.PrefetchScalarGridSpec(
            num_scalar_prefetch=0,
            grid=(B, nq, nk),
            in_specs=[
                pl.BlockSpec((1, tq, d_in), lambda b, qi, ki: (b, qi, 0)),   # x (q tile)
                pl.BlockSpec((1, tk, d_in), lambda b, qi, ki: (b, ki, 0)),   # x (kv tile)
                pl.BlockSpec((d_in, d_out_p), lambda b, qi, ki: (0, 0)),     # Wq (scaled)
                pl.BlockSpec((d_in, 2 * d_out_p), lambda b, qi, ki: (0, 0)), # fused Wkv
            ],
            out_specs=pl.BlockSpec((1, tq, d_out_p), lambda b, qi, ki: (b, qi, 0)),
            scratch_shapes=[
                pltpu.VMEM((tq, d_out_p), compute_dtype),   # projected q tile
                pltpu.VMEM((tq, 1), jnp.float32),           # running max m
                pltpu.VMEM((tq, 1), jnp.float32),           # running denom l
                pltpu.VMEM((tq, d_out_p), jnp.float32),     # output accumulator
            ],
        ),
        compiler_params=pltpu.CompilerParams(
            dimension_semantics=("parallel", "parallel", "arbitrary")),
    )(xc, xc, wq_s, wkv)

    return out[..., :d_out] if d_out_p != d_out else out


def _reference(x, w_query, w_key, w_value):
    # Pure-JAX mirror of the PyTorch forward (mask result discarded -> no mask).
    d_out = w_query.shape[0]
    q = x @ w_query.T
    k = x @ w_key.T
    v = x @ w_value.T
    scores = jnp.einsum("bqd,bkd->bqk", q, k)
    norm = scores / (d_out ** 0.5)
    w = jax.nn.softmax(norm, axis=-1)
    return jnp.einsum("bqk,bkd->bqd", w, v)


if __name__ == "__main__":
    # Small shapes consistent with the module: batch=2, seq(context)=8, d_in=32, d_out=32.
    B, T, d_in, d_out = 2, 8, 32, 32

    key = jax.random.PRNGKey(0)
    kx, kq, kk, kv = jax.random.split(key, 4)

    x = jax.random.normal(kx, (B, T, d_in), dtype=jnp.float32)
    bound = 1.0 / (d_in ** 0.5)   # nn.Linear(d_in, d_out, bias=False)-style weights
    w_query = jax.random.uniform(kq, (d_out, d_in), jnp.float32, -bound, bound)
    w_key = jax.random.uniform(kk, (d_out, d_in), jnp.float32, -bound, bound)
    w_value = jax.random.uniform(kv, (d_out, d_in), jnp.float32, -bound, bound)

    ref = _reference(x, w_query, w_key, w_value)

    # 1) f32 compute (matches the PyTorch module's dtype).
    out = jax.block_until_ready(causal_attention(x, w_query, w_key, w_value))
    assert out.shape == (B, T, d_out)
    assert jnp.allclose(out, ref, atol=1e-3, rtol=1e-3)

    # 2) bf16-operand / f32-accumulation fast path (looser tolerance).
    out_bf16 = jax.block_until_ready(
        causal_attention(x, w_query, w_key, w_value, compute_dtype=jnp.bfloat16))
    assert jnp.allclose(out_bf16.astype(jnp.float32), ref, atol=3e-2, rtol=3e-2)

    # 3) Multi-tile path (4 q-tiles x 4 kv-tiles) to exercise the online softmax.
    T2 = 256
    x2 = jax.random.normal(kx, (B, T2, d_in), dtype=jnp.float32)
    out2 = jax.block_until_ready(
        causal_attention(x2, w_query, w_key, w_value, q_tile=64, kv_tile=64))
    ref2 = _reference(x2, w_query, w_key, w_value)
    assert out2.shape == (B, T2, d_out)
    assert jnp.allclose(out2, ref2, atol=1e-3, rtol=1e-3)

    print("KERNEL_OK")
</pallas_src>

<mosaic_0001>
module attributes {stable_mosaic.version = 11 : i64} {
  func.func @_flash_attention_kernel(%arg0: i32, %arg1: i32, %arg2: i32, %arg3: memref<1x8x32xf32, #tpu.memory_space<vmem>>, %arg4: memref<1x8x32xf32, #tpu.memory_space<vmem>>, %arg5: memref<32x128xf32, #tpu.memory_space<vmem>>, %arg6: memref<32x256xf32, #tpu.memory_space<vmem>>, %arg7: memref<1x8x128xf32, #tpu.memory_space<vmem>>, %arg8: memref<8x128xf32, #tpu.memory_space<vmem>>, %arg9: memref<8x1xf32, #tpu.memory_space<vmem>>, %arg10: memref<8x1xf32, #tpu.memory_space<vmem>>, %arg11: memref<8x128xf32, #tpu.memory_space<vmem>>) attributes {dimension_semantics = [#tpu.dimension_semantics<parallel>, #tpu.dimension_semantics<parallel>, #tpu.dimension_semantics<arbitrary>], iteration_bounds = array<i64: 2, 1, 1>, scalar_prefetch = 0 : i64, scratch_operands = 4 : i64, tpu.core_type = #tpu.core_type<tc>, window_params = [{transform_indices = @transform_0, window_bounds = array<i64: 1, 8, 32>}, {transform_indices = @transform_1, window_bounds = array<i64: 1, 8, 32>}, {pipeline_mode = #tpu.pipeline_mode<synchronous>, transform_indices = @transform_2, window_bounds = array<i64: 32, 128>}, {pipeline_mode = #tpu.pipeline_mode<synchronous>, transform_indices = @transform_3, window_bounds = array<i64: 32, 256>}, {transform_indices = @transform_4, window_bounds = array<i64: 1, 8, 128>}]} {
    %c0_i32 = arith.constant 0 : i32
    %0 = arith.cmpi eq, %arg2, %c0_i32 : i32
    %1 = arith.extui %0 : i1 to i32
    %c0_i32_0 = arith.constant 0 : i32
    %2 = arith.cmpi ne, %1, %c0_i32_0 : i32
    scf.if %2 {
      %c0_25 = arith.constant 0 : index
      %c0_26 = arith.constant 0 : index
      %c0_27 = arith.constant 0 : index
      %36 = vector.load %arg3[%c0_25, %c0_26, %c0_27] : memref<1x8x32xf32, #tpu.memory_space<vmem>>, vector<1x8x32xf32>
      %37 = vector.shape_cast %36 : vector<1x8x32xf32> to vector<8x32xf32>
      %c0_28 = arith.constant 0 : index
      %c0_29 = arith.constant 0 : index
      %38 = vector.load %arg5[%c0_28, %c0_29] : memref<32x128xf32, #tpu.memory_space<vmem>>, vector<32x128xf32>
      %cst_30 = arith.constant dense<0.000000e+00> : vector<8x128xf32>
      %39 = tpu.matmul %37, %38, %cst_30 {dimension_numbers = #tpu.dot_dimension_numbers<[1], [0], [0], [1], [0, 0, 1, 1], [], []>} : vector<8x32xf32>, vector<32x128xf32>, vector<8x128xf32> -> vector<8x128xf32>
      %c0_31 = arith.constant 0 : index
      %c0_32 = arith.constant 0 : index
      %40 = vector.load %arg8[%c0_31, %c0_32] : memref<8x128xf32, #tpu.memory_space<vmem>>, vector<8x128xf32>
      tpu.vector_store %arg8[%c0_31, %c0_32], %39 {strides = array<i32>} : memref<8x128xf32, #tpu.memory_space<vmem>>, vector<8x128xf32>,
      %cst_33 = arith.constant 0xFF800000 : f32
      %41 = vector.broadcast %cst_33 : f32 to vector<8x1xf32>
      %c0_34 = arith.constant 0 : index
      %c0_35 = arith.constant 0 : index
      %42 = vector.load %arg9[%c0_34, %c0_35] : memref<8x1xf32, #tpu.memory_space<vmem>>, vector<8x1xf32>
      tpu.vector_store %arg9[%c0_34, %c0_35], %41 {strides = array<i32>} : memref<8x1xf32, #tpu.memory_space<vmem>>, vector<8x1xf32>,
      %cst_36 = arith.constant 0.000000e+00 : f32
      %43 = vector.broadcast %cst_36 : f32 to vector<8x1xf32>
      %c0_37 = arith.constant 0 : index
      %c0_38 = arith.constant 0 : index
      %44 = vector.load %arg10[%c0_37, %c0_38] : memref<8x1xf32, #tpu.memory_space<vmem>>, vector<8x1xf32>
      tpu.vector_store %arg10[%c0_37, %c0_38], %43 {strides = array<i32>} : memref<8x1xf32, #tpu.memory_space<vmem>>, vector<8x1xf32>,
      %cst_39 = arith.constant 0.000000e+00 : f32
      %45 = vector.broadcast %cst_39 : f32 to vector<8x128xf32>
      %c0_40 = arith.constant 0 : index
      %c0_41 = arith.constant 0 : index
      %46 = vector.load %arg11[%c0_40, %c0_41] : memref<8x128xf32, #tpu.memory_space<vmem>>, vector<8x128xf32>
      tpu.vector_store %arg11[%c0_40, %c0_41], %45 {strides = array<i32>} : memref<8x128xf32, #tpu.memory_space<vmem>>, vector<8x128xf32>,
    } else {
    }
    %c0 = arith.constant 0 : index
    %c0_1 = arith.constant 0 : index
    %c0_2 = arith.constant 0 : index
    %3 = vector.load %arg4[%c0, %c0_1, %c0_2] : memref<1x8x32xf32, #tpu.memory_space<vmem>>, vector<1x8x32xf32>
    %4 = vector.shape_cast %3 : vector<1x8x32xf32> to vector<8x32xf32>
    %c0_3 = arith.constant 0 : index
    %c0_4 = arith.constant 0 : index
    %5 = vector.load %arg6[%c0_3, %c0_4] : memref<32x256xf32, #tpu.memory_space<vmem>>, vector<32x256xf32>
    %cst = arith.constant dense<0.000000e+00> : vector<8x256xf32>
    %6 = tpu.matmul %4, %5, %cst {dimension_numbers = #tpu.dot_dimension_numbers<[1], [0], [0], [1], [0, 0, 1, 1], [], []>} : vector<8x32xf32>, vector<32x256xf32>, vector<8x256xf32> -> vector<8x256xf32>
    %7 = vector.extract_strided_slice %6 {offsets = [0, 0], sizes = [8, 128], strides = [1, 1]} : vector<8x256xf32> to vector<8x128xf32>
    %8 = vector.extract_strided_slice %6 {offsets = [0, 128], sizes = [8, 128], strides = [1, 1]} : vector<8x256xf32> to vector<8x128xf32>
    %c0_5 = arith.constant 0 : index
    %c0_6 = arith.constant 0 : index
    %9 = vector.load %arg8[%c0_5, %c0_6] : memref<8x128xf32, #tpu.memory_space<vmem>>, vector<8x128xf32>
    %cst_7 = arith.constant dense<0.000000e+00> : vector<8x8xf32>
    %10 = tpu.matmul %9, %7, %cst_7 {dimension_numbers = #tpu.dot_dimension_numbers<[1], [1], [0], [0], [0, 0, 1, 0], [], []>} : vector<8x128xf32>, vector<8x128xf32>, vector<8x8xf32> -> vector<8x8xf32>
    %c0_8 = arith.constant 0 : index
    %c0_9 = arith.constant 0 : index
    %11 = vector.load %arg9[%c0_8, %c0_9] : memref<8x1xf32, #tpu.memory_space<vmem>>, vector<8x1xf32>
    %cst_10 = arith.constant dense<0xFF800000> : vector<8xf32>
    %12 = vector.multi_reduction <maximumf>, %10, %cst_10 [1] : vector<8x8xf32> to vector<8xf32>
    %13 = vector.shape_cast %12 : vector<8xf32> to vector<8x1xf32>
    %14 = arith.maximumf %11, %13 : vector<8x1xf32>
    %15 = arith.subf %11, %14 : vector<8x1xf32>
    %16 = math.exp %15 : vector<8x1xf32>
    %17 = vector.broadcast %14 : vector<8x1xf32> to vector<8x8xf32>
    %18 = arith.subf %10, %17 : vector<8x8xf32>
    %19 = math.exp %18 : vector<8x8xf32>
    %c0_11 = arith.constant 0 : index
    %c0_12 = arith.constant 0 : index
    %20 = vector.load %arg10[%c0_11, %c0_12] : memref<8x1xf32, #tpu.memory_space<vmem>>, vector<8x1xf32>
    %21 = arith.mulf %16, %20 : vector<8x1xf32>
    %cst_13 = arith.constant dense<0.000000e+00> : vector<8xf32>
    %22 = vector.multi_reduction <add>, %19, %cst_13 [1] : vector<8x8xf32> to vector<8xf32>
    %23 = vector.shape_cast %22 : vector<8xf32> to vector<8x1xf32>
    %24 = arith.addf %21, %23 : vector<8x1xf32>
    %c0_14 = arith.constant 0 : index
    %c0_15 = arith.constant 0 : index
    %25 = vector.load %arg10[%c0_14, %c0_15] : memref<8x1xf32, #tpu.memory_space<vmem>>, vector<8x1xf32>
    tpu.vector_store %arg10[%c0_14, %c0_15], %24 {strides = array<i32>} : memref<8x1xf32, #tpu.memory_space<vmem>>, vector<8x1xf32>,
    %c0_16 = arith.constant 0 : index
    %c0_17 = arith.constant 0 : index
    %26 = vector.load %arg11[%c0_16, %c0_17] : memref<8x128xf32, #tpu.memory_space<vmem>>, vector<8x128xf32>
    %27 = vector.broadcast %16 : vector<8x1xf32> to vector<8x128xf32>
    %28 = arith.mulf %27, %26 : vector<8x128xf32>
    %cst_18 = arith.constant dense<0.000000e+00> : vector<8x128xf32>
    %29 = tpu.matmul %19, %8, %cst_18 {dimension_numbers = #tpu.dot_dimension_numbers<[1], [0], [0], [1], [0, 0, 1, 1], [], []>} : vector<8x8xf32>, vector<8x128xf32>, vector<8x128xf32> -> vector<8x128xf32>
    %30 = arith.addf %28, %29 : vector<8x128xf32>
    %c0_19 = arith.constant 0 : index
    %c0_20 = arith.constant 0 : index
    %31 = vector.load %arg11[%c0_19, %c0_20] : memref<8x128xf32, #tpu.memory_space<vmem>>, vector<8x128xf32>
    tpu.vector_store %arg11[%c0_19, %c0_20], %30 {strides = array<i32>} : memref<8x128xf32, #tpu.memory_space<vmem>>, vector<8x128xf32>,
    %c0_21 = arith.constant 0 : index
    %c0_22 = arith.constant 0 : index
    %32 = vector.load %arg9[%c0_21, %c0_22] : memref<8x1xf32, #tpu.memory_space<vmem>>, vector<8x1xf32>
    tpu.vector_store %arg9[%c0_21, %c0_22], %14 {strides = array<i32>} : memref<8x1xf32, #tpu.memory_space<vmem>>, vector<8x1xf32>,
    %c0_i32_23 = arith.constant 0 : i32
    %33 = arith.cmpi eq, %arg2, %c0_i32_23 : i32
    %34 = arith.extui %33 : i1 to i32
    %c0_i32_24 = arith.constant 0 : i32
    %35 = arith.cmpi ne, %34, %c0_i32_24 : i32
    scf.if %35 {
      %c0_25 = arith.constant 0 : index
      %c0_26 = arith.constant 0 : index
      %36 = vector.load %arg10[%c0_25, %c0_26] : memref<8x1xf32, #tpu.memory_space<vmem>>, vector<8x1xf32>
      %37 = tpu.reciprocal %36 {approx = true} : vector<8x1xf32> -> vector<8x1xf32>
      %38 = arith.mulf %36, %37 : vector<8x1xf32>
      %cst_27 = arith.constant 2.000000e+00 : f32
      %39 = vector.broadcast %cst_27 : f32 to vector<8x1xf32>
      %40 = arith.subf %39, %38 : vector<8x1xf32>
      %41 = arith.mulf %37, %40 : vector<8x1xf32>
      %c0_28 = arith.constant 0 : index
      %c0_29 = arith.constant 0 : index
      %42 = vector.load %arg11[%c0_28, %c0_29] : memref<8x128xf32, #tpu.memory_space<vmem>>, vector<8x128xf32>
      %43 = vector.broadcast %41 : vector<8x1xf32> to vector<8x128xf32>
      %44 = arith.mulf %42, %43 : vector<8x128xf32>
      %c0_30 = arith.constant 0 : index
      %c0_31 = arith.constant 0 : index
      %c0_32 = arith.constant 0 : index
      %45 = vector.load %arg7[%c0_30, %c0_31, %c0_32] : memref<1x8x128xf32, #tpu.memory_space<vmem>>, vector<1x8x128xf32>
      %46 = vector.shape_cast %45 : vector<1x8x128xf32> to vector<8x128xf32>
      %47 = vector.shape_cast %44 : vector<8x128xf32> to vector<1x8x128xf32>
      tpu.vector_store %arg7[%c0_30, %c0_31, %c0_32], %47 {strides = array<i32>} : memref<1x8x128xf32, #tpu.memory_space<vmem>>, vector<1x8x128xf32>,
    } else {
    }
    return
  }
  func.func @transform_0(%arg0: i32, %arg1: i32, %arg2: i32) -> (i32, i32, i32) {
    %c0_i32 = arith.constant 0 : i32
    %c0_i32_0 = arith.constant 0 : i32
    return %arg0, %arg1, %c0_i32 : i32, i32, i32
  }
  func.func @transform_1(%arg0: i32, %arg1: i32, %arg2: i32) -> (i32, i32, i32) {
    %c0_i32 = arith.constant 0 : i32
    %c0_i32_0 = arith.constant 0 : i32
    return %arg0, %arg2, %c0_i32 : i32, i32, i32
  }
  func.func @transform_2(%arg0: i32, %arg1: i32, %arg2: i32) -> (i32, i32) {
    %c0_i32 = arith.constant 0 : i32
    %c0_i32_0 = arith.constant 0 : i32
    %c0_i32_1 = arith.constant 0 : i32
    return %c0_i32, %c0_i32_0 : i32, i32
  }
  func.func @transform_3(%arg0: i32, %arg1: i32, %arg2: i32) -> (i32, i32) {
    %c0_i32 = arith.constant 0 : i32
    %c0_i32_0 = arith.constant 0 : i32
    %c0_i32_1 = arith.constant 0 : i32
    return %c0_i32, %c0_i32_0 : i32, i32
  }
  func.func @transform_4(%arg0: i32, %arg1: i32, %arg2: i32) -> (i32, i32, i32) {
    %c0_i32 = arith.constant 0 : i32
    %c0_i32_0 = arith.constant 0 : i32
    return %arg0, %arg1, %c0_i32 : i32, i32, i32
  }
}

</mosaic_0001>

<bundles_post_ra>
// kernel: tpu_custom_call.1
= control target key start
LH: loop header
LB: loop body
LE: loop exit
PB: predicated region body
PF: predicated region fallthrough
CT: control target
= control target key end

     0   :  { %s1540_s0 = inlined_call_operand.hbm [shape: f32[2,8,32], index: 0, kind: input, shape index: {}]   ;;  %s1541_s1 = inlined_call_operand.hbm [shape: f32[2,8,32], index: 1, kind: input, shape index: {}]   ;;  %s1542_s2 = inlined_call_operand.hbm [shape: f32[32,128], index: 2, kind: input, shape index: {}]   ;;  %s1543_s3 = inlined_call_operand.hbm [shape: f32[32,256], index: 3, kind: input, shape index: {}]   ;;  %s1544_s4 = inlined_call_operand.hbm [shape: f32[2,8,128], index: 4, kind: output, shape index: {}]  }
   0x1   :  { %1550 = sst [smem:[#allocation21_spill]] %s1542_s2 }
   0x2   :  { %1551 = sst [smem:[#allocation22_spill]] %s1543_s3 }
   0x3   :  { %9 = vsyncpa [#allocation7], 0 }
   0x4   :  { %11 = vsyncpa [#allocation7 + $0x1], 0 }
   0x5   :  { %12 = vsyncpa [#allocation10], 0 }
   0x6   :  { %14 = vsyncpa [#allocation10 + $0x1], 0 }
   0x7   :  { %15 = vsyncpa [#allocation13], 0 }
   0x8   :  { %16 = vsyncpa [#allocation8], 0 }
   0x9   :  { %18 = vsyncpa [#allocation8 + $0x1], 0  ;;  %s1237_s15 = smov 0   ;;  %s1239_s16 = smov 0  }
   0xa   :  { %s1241_s17 = smov 0   ;;  %s1243_s18 = smov 0  }
   0xb   :  { %s1245_s19 = smov 0   ;;  %s1247_s20 = smov 0  }
   0xc LB: > { %s1268_s21 = sadd.s32 4294967295, %s1196_s20   ;;  %s815_s22 = sadd.s32 4294967294, %s1196_s20   ;;  %s1196_s20 = sphi %s1247_s20, %s24_s20   ;;  %s1192_s19 = sphi %s1245_s19, %s1576_s19   ;;  %s1188_s18 = sphi %s1243_s18, %s1575_s18   ;;  %s1184_s17 = sphi %s1241_s17, %s1574_s17   ;;  %s1180_s16 = sphi %s1239_s16, %s1573_s16   ;;  %s1176_s15 = sphi %s1237_s15, %s1572_s15  }
   0xd   : > { %p65_p0 = scmp.ne.s32.totalorder %s1180_s16, %s1176_s15  ;;  %p1545_p1 = scmp.eq.s32.totalorder %s1268_s21, 0 }
   0xe   : > { %p167_p3 = scmp.eq.s32.totalorder %s815_s22, 1  ;;  %p816_p5 = scmp.ge.s32.totalorder %s1196_s20, 1 }
   0xf   : > { %p1277_p4 = por %p1545_p1, %p65_p0  ;;  %p174_p7 = scmp.lt.s32.totalorder %s1196_s20, 3 }
  0x10   : > { %p1282_p6 = por %p167_p3, %p65_p0  ;;  %s1198_s26 = smov [#allocation11]  }
  0x11   : > { %s1552_s23 = scalar_select %p1277_p4, 1, 0 }
  0x12   : > { %s1553_s24 = scalar_select %p1282_p6, 1, 0 }
  0x13   : > { %p1287_p8 = pnand %p816_p5, %p174_p7  ;;  %s186_s27 = sshll.u32 %s1198_s26, 4  ;;  %s1291_s27 = int_to_ptr.vmem [resolvable:$true] %s186_s27 }
  0x14   : > { %s1199_s29 = smov [#allocation12]   ;;  %s1556_s2 = sld [smem:[#allocation21_spill]] }
  0x15   : > { %s1554_s25 = scalar_select %p1287_p8, 1, 0 }
  0x16   : > { %p895_p9 = pneg %p1287_p8  ;;  %s199_s30 = sshll.u32 %s1199_s29, 4  ;;  %s1302_s30 = int_to_ptr.vmem [resolvable:$true] %s199_s30 }
  0x18   : > { %p1298_p11 = pnand %p895_p9, %p1545_p1 }
  0x1a   : > { %s986_s7 = scalar_lea.hbm %s1556_s2, 512  ;;  %p988_p13 = pneg %p1298_p11 }
  0x1b   : > { %p987_p12 = scmp.ne.s32.totalorder %s1556_s2, %s986_s7  ;;  %p993_p5 = scmp.lt.u32.totalorder %s986_s7, %s1556_s2 }
  0x1d   : > { %p989_p0 = pnand %p988_p13, %p987_p12 }
  0x1f   : > { %p990_p3 = pneg %p989_p0 }
  0x21   : > { %p995_p7 = pnand %p993_p5, %p990_p3 }
  0x23   : > { %998 = shalt.err (!%p995_p7)
}
  0x24   : > { %s999_s12 = scalar_lea.vmem %s1291_s27, 512  ;;  %p1007_p2 = scmp.lt.s32.totalorder %s1291_s27, %s1291_s27 }
  0x25   : > { %p1000_p9 = scmp.ne.s32.totalorder %s1291_s27, %s999_s12  ;;  %p1008_p12 = scmp.lt.s32.totalorder %s999_s12, %s999_s12 }
  0x27   : > { %p1002_p10 = pnand %p1000_p9, %p988_p13  ;;  %p1009_p0 = por %p1008_p12, %p1007_p2 }
  0x29   : > { %p1003_p1 = pneg %p1002_p10 }
  0x2b   : > { %p1010_p6 = pnand %p1009_p0, %p1003_p1 }
  0x2d   : > { %1013 = shalt.err (!%p1010_p6)
}
  0x2e   : > { %s1200_s13 = smov 128   ;;  %s1201_s14 = smov 8  }
  0x2f   : > { %898 = dma.hbm_to_vmem [thread:$0]  (!%p1298_p11), %s1556_s2, 512, %s1291_s27, [#allocation10], %s1200_s13, %s1200_s13, %s1201_s14  }
  0x30   : > { %s1557_s3 = sld [smem:[#allocation22_spill]] }
  0x36   : > { %s1014_s6 = scalar_lea.hbm %s1557_s3, 1024 }
  0x37   : > { %p1015_p2 = scmp.ne.s32.totalorder %s1557_s3, %s1014_s6  ;;  %p1021_p10 = scmp.lt.u32.totalorder %s1014_s6, %s1557_s3 }
  0x39   : > { %p1017_p1 = pnand %p1015_p2, %p988_p13 }
  0x3b   : > { %p1018_p6 = pneg %p1017_p1 }
  0x3d   : > { %p1023_p3 = pnand %p1021_p10, %p1018_p6 }
  0x3f   : > { %1026 = shalt.err (!%p1023_p3)
}
  0x40   : > { %s1027_s27 = scalar_lea.vmem %s1302_s30, 1024  ;;  %p1035_p12 = scmp.lt.s32.totalorder %s1302_s30, %s1302_s30 }
  0x41   : > { %p1028_p5 = scmp.ne.s32.totalorder %s1302_s30, %s1027_s27  ;;  %p1036_p0 = scmp.lt.s32.totalorder %s1027_s27, %s1027_s27 }
  0x43   : > { %p1030_p7 = pnand %p1028_p5, %p988_p13  ;;  %p1037_p2 = por %p1036_p0, %p1035_p12 }
  0x45   : > { %p1031_p9 = pneg %p1030_p7 }
  0x47   : > { %p1038_p1 = pnand %p1037_p2, %p1031_p9 }
  0x49   : > { %1041 = shalt.err (!%p1038_p1)
}
  0x4a   : > { %s1202_s11 = smov 256   ;;  %s1203_s12 = smov 16  }
  0x4b   : > { %901 = dma.hbm_to_vmem [thread:$0]  (!%p1298_p11), %s1557_s3, 1024, %s1302_s30, [#allocation13], %s1202_s11, %s1202_s11, %s1203_s12  }
  0x4c   : > { %s43_s22 = sadd.s32 1, %s1192_s19  ;;  %s52_s26 = sadd.s32 1, %s1184_s17 }
  0x4d   : > { %p45_p13 = scmp.ge.s32.totalorder %s43_s22, 2  ;;  %p59_p6 = scmp.ne.s32.totalorder %s1184_s17, %s1180_s16 }
  0x4e   : > { %p60_p10 = scmp.eq.s32.totalorder %s1196_s20, 0  ;;  %p915_p3 = scmp.lt.s32.totalorder %s1196_s20, 2 }
  0x4f   : > { %s1578_s22 = smov (%p45_p13, %s43_s22), 0  ;;  %p1559_p7 = scmp.eq.s32.totalorder %s1268_s21, 1 }
  0x50   : > { %1558 = sst [smem:[#allocation20_spill]] %s1578_s22  ;;  %p61_p5 = por %p60_p10, %p59_p6 }
  0x51   : > { %p1366_p9 = por %p1559_p7, %p59_p6  ;;  %s47_s28 = ssub.s32 %s1192_s19, %s1578_s22 }
  0x52   : > { %s213_s5 = sand.u32 1, %s1184_s17   ;;  %p50_p12 = scmp.eq.s32.totalorder %s47_s28, 0 }
  0x53   : > { %s1560_s29 = scalar_select %p1366_p9, 1, 0 }
  0x54   : > { %s1373_s30 = sshll.u32 %s213_s5, 3  ;;  %s821_s6 = sshll.u32 %s1192_s19, 7 }
  0x55   : > { %s1377_s7 = scalar_select %p50_p12, %s1184_s17, %s52_s26  }
  0x56   : > { %s1382_s10 = scalar_lea.hbm %s1540_s0, %s821_s6  ;;  %s217_s27 = scalar_lea.vmem [#allocation6], %s1373_s30 }
  0x57   : > { %s225_s11 = sshll.u32 %s217_s27, 4  ;;  %p1387_p11 = pnand %p915_p3, %p61_p5  ;;  %s1391_s11 = int_to_ptr.vmem [resolvable:$true] %s225_s11 }
  0x58   : > { %s1396_s26 = scalar_lea.hbm %s1541_s1, %s821_s6  ;;  %s214_s28 = scalar_lea.sflag [#allocation7], %s213_s5 }
  0x59   : > { %s1042_s8 = scalar_lea.hbm %s1382_s10, 128  ;;  %p1044_p2 = pneg %p1387_p11 }
  0x5a   : > { %p1043_p0 = scmp.ne.s32.totalorder %s1382_s10, %s1042_s8  ;;  %s1047_s2 = scalar_lea.hbm %s1540_s0, 256 }
  0x5b   : > { %p1048_p6 = scmp.lt.u32.totalorder %s1382_s10, %s1540_s0  ;;  %p1049_p10 = scmp.lt.u32.totalorder %s1047_s2, %s1042_s8 }
  0x5c   : > { %p1045_p1 = pnand %p1044_p2, %p1043_p0  ;;  %p1051_p5 = scmp.lt.u32.totalorder %s1042_s8, %s1382_s10 }
  0x5d   : > { %p1050_p3 = por %p1049_p10, %p1048_p6 }
  0x5e   : > { %p1046_p13 = pneg %p1045_p1 }
  0x5f   : > { %p1052_p7 = por %p1051_p5, %p1050_p3 }
  0x61   : > { %p1053_p12 = pnand %p1052_p7, %p1046_p13 }
  0x63   : > { %1056 = shalt.err (!%p1053_p12)
}
  0x64   : > { %s1057_s5 = scalar_lea.vmem %s1391_s11, 128  ;;  %s1204_s6 = smov [#allocation6]  }
  0x65   : > { %p1058_p0 = scmp.ne.s32.totalorder %s1391_s11, %s1057_s5  ;;  %s1062_s13 = sshll.u32 %s1204_s6, 4  ;;  %s1063_s13 = int_to_ptr.vmem [resolvable:$false] %s1062_s13 }
  0x66   : > { %s1064_s3 = scalar_lea.vmem %s1063_s13, 256  ;;  %p1065_p4 = scmp.lt.s32.totalorder %s1391_s11, %s1063_s13 }
  0x67   : > { %p1060_p1 = pnand %p1058_p0, %p1044_p2  ;;  %p1066_p6 = scmp.lt.s32.totalorder %s1064_s3, %s1057_s5 }
  0x69   : > { %p1061_p9 = pneg %p1060_p1  ;;  %p1067_p10 = por %p1066_p6, %p1065_p4 }
  0x6b   : > { %p1068_p3 = pnand %p1067_p10, %p1061_p9 }
  0x6d   : > { %1071 = shalt.err (!%p1068_p3)
}
  0x6e   : > { %905 = dma.hbm_to_vmem [thread:$0]  (!%p1387_p11), %s1382_s10, 128, %s1391_s11, %s214_s28  }
  0x6f   : > { %s232_s2 = sand.u32 1, %s1196_s20   ;;  %s236_s22 = scalar_lea.vmem [#allocation9], %s1373_s30 }
  0x70   : > { %s244_s14 = sshll.u32 %s236_s22, 4  ;;  %s233_s8 = scalar_lea.sflag [#allocation10], %s232_s2  ;;  %s245_s14 = int_to_ptr.vmem [resolvable:$true] %s244_s14 }
  0x71   : > { %s1072_s9 = scalar_lea.hbm %s1396_s26, 128  ;;  %s1077_s6 = scalar_lea.hbm %s1541_s1, 256 }
  0x72   : > { %p1073_p4 = scmp.ne.s32.totalorder %s1396_s26, %s1072_s9  ;;  %p1078_p5 = scmp.lt.u32.totalorder %s1396_s26, %s1541_s1 }
  0x73   : > { %p1079_p7 = scmp.lt.u32.totalorder %s1077_s6, %s1072_s9  ;;  %p1081_p0 = scmp.lt.u32.totalorder %s1072_s9, %s1396_s26 }
  0x74   : > { %p1075_p9 = pnand %p1073_p4, %p1044_p2 }
  0x75   : > { %p1080_p12 = por %p1079_p7, %p1078_p5 }
  0x76   : > { %p1076_p13 = pneg %p1075_p9 }
  0x77   : > { %p1082_p1 = por %p1081_p0, %p1080_p12 }
  0x79   : > { %p1083_p6 = pnand %p1082_p1, %p1076_p13 }
  0x7b   : > { %1086 = shalt.err (!%p1083_p6)
}
  0x7c   : > { %s1087_s30 = scalar_lea.vmem %s245_s14, 128  ;;  %s1205_s10 = smov [#allocation9]  }
  0x7d   : > { %p1088_p10 = scmp.ne.s32.totalorder %s245_s14, %s1087_s30  ;;  %s1092_s11 = sshll.u32 %s1205_s10, 4  ;;  %s1093_s11 = int_to_ptr.vmem [resolvable:$false] %s1092_s11 }
  0x7e   : > { %s1094_s28 = scalar_lea.vmem %s1093_s11, 256  ;;  %p1095_p9 = scmp.lt.s32.totalorder %s245_s14, %s1093_s11 }
  0x7f   : > { %p1090_p3 = pnand %p1088_p10, %p1044_p2  ;;  %p1096_p8 = scmp.lt.s32.totalorder %s1094_s28, %s1087_s30 }
  0x81   : > { %p1091_p4 = pneg %p1090_p3  ;;  %p1097_p5 = por %p1096_p8, %p1095_p9 }
  0x83   : > { %p1098_p7 = pnand %p1097_p5, %p1091_p4 }
  0x85   : > { %1101 = shalt.err (!%p1098_p7)
}
  0x86   : > { %908 = dma.hbm_to_vmem [thread:$0]  (!%p1387_p11), %s1396_s26, 128, %s245_s14, %s233_s8  }
  0x87   : > { %p1562_p13 = scmp.ne.s32.totalorder %s1554_s25, 0 }
  0x88   : > { %s1447_s2 = sand.u32 (!%p1562_p13), 1, %s1180_s16   ;;  %p1563_p8 = scmp.ne.s32.totalorder (!%p1562_p13), %s1552_s23, 0 }
  0x89   : > { %253 = sbr.rel (%p1562_p13) target bundleno = 1196 (0x4ac), region = 36  ;;  %s1450_s22 = sshll.u32 (!%p1562_p13), %s1447_s2, 3 }
  0x8a   : > { %s256_s9 = scalar_lea.sflag (!%p1562_p13), [#allocation7], %s1447_s2  ;;  %s259_s27 = scalar_lea.vmem (!%p1562_p13), [#allocation6], %s1450_s22 }
  0x90   : > { %1155 = dma.done.wait (%p1563_p8), %s256_s9, 128  }
  0x91   : > { %1157 = vsyncadd (%p1563_p8), %s256_s9, 4294967168  ;;  %s264_s25 = sand.u32 1, %s1268_s21   ;;  %s268_s26 = scalar_lea.vmem [#allocation9], %s1450_s22 }
  0x92   : > { %s265_s12 = scalar_lea.sflag [#allocation10], %s264_s25 }
  0x93   : > { %1159 = dma.done.wait (%p1563_p8), %s265_s12, 128  }
  0x94   : > { %1161 = vsyncadd (%p1563_p8), %s265_s12, 4294967168  ;;  %p1564_p11 = scmp.eq.s32.totalorder %s1268_s21, 0 }
  0x96   : > { %1163 = dma.done.wait (%p1564_p11), [#allocation10], 512   ;;  %p1565_p2 = pmov %p1564_p11 }
  0x98   : > { %1165 = vsyncadd (%p1565_p2), [#allocation10], 4294966784  ;;  %p1566_p12 = pmov %p1565_p2 }
  0x99   : > { %p1567_p0 = pmov %p1565_p2 }
  0x9a   : > { %1167 = dma.done.wait (%p1566_p12), [#allocation13], 1024  }
  0x9b   : > { %1169 = vsyncadd (%p1567_p0), [#allocation13], 4294966272  ;;  %v1206_v0 = vmov 0.0|0.0   ;;  %v1207_v1 = vmov 0.0   ;;  %vm1208_vm0 = vmmov 0   ;;  %v396_v2 = vld [vmem:[#allocation12 + $0x8] sm:$0xff] }
  0x9c   : > { %867 = vmatprep.subr.bf16.mxu0 %v1206_v0  ;;  %471 = vmatprep.mubr.f32.mxu1 %v1207_v1  ;;  %v398_v3 = vld [vmem:[#allocation12 + $0x18] sm:$0xff]  ;;  %v395_v4 = vld [vmem:[#allocation12] sm:$0xff]  ;;  %v397_v6 = vld [vmem:[#allocation12 + $0x10] sm:$0xff]  ;;  %vm315_vm1 = vcmask 261120   ;;  %vm390_vm2 = vcmask 7168   ;;  %v1209_v26 = vmov -inf  }
  0x9d   : > { %854 = vmatprep.mubr.msk.f32.mxu0 %vm1208_vm0, %v1207_v1  ;;  %v873_v5 = vpack.c.bf16 %v398_v3, %v396_v2  ;;  %v311_v7 = vld [vmem:[#allocation11] sm:$0xff]  ;;  %v312_v8 = vld [vmem:[#allocation11 + $0x8] sm:$0xff]  ;;  %v875_v9 = vpack.c.bf16 %v397_v6, %v395_v4  ;;  %v402_v12 = vld [vmem:[#allocation12 + $0x38] sm:$0xff]  ;;  %391 = vst.msk [vmem:[#allocation3] sm:$0xff] %vm390_vm2, %v1209_v26  ;;  %vm550_vm3 = vcmask 64512   ;;  %v1210_v30 = vmov 0  }
  0x9e   : > { %v868_v10 = vpack.c.bf16 %v312_v8, %v311_v7  ;;  %v400_v11 = vld [vmem:[#allocation12 + $0x28] sm:$0xff]  ;;  %v399_v13 = vld [vmem:[#allocation12 + $0x20] sm:$0xff]  ;;  %v401_v15 = vld [vmem:[#allocation12 + $0x30] sm:$0xff]  ;;  %392 = vst.msk [vmem:[#allocation4] sm:$0xff] %vm390_vm2, %v1207_v1  ;;  %978 = vset.pattern.permute.xlu0 %v1210_v30  ;;  %979 = vset.pattern.permute.xlu1 %v1210_v30  ;;  %s834_s21 = sshll.u32 %s1188_s18, 7  ;;  %s305_s23 = scalar_lea.vmem [#allocation14], %s1450_s22 }
  0x9f   : > { %874 = vmatprep.subr.bf16.mxu1 %v873_v5  ;;  %v877_v14 = vpack.c.bf16 %v402_v12, %v400_v11  ;;  %v313_v16 = vld [vmem:[#allocation11 + $0x10] sm:$0xff]  ;;  %v314_v17 = vld [vmem:[#allocation11 + $0x18] sm:$0xff]  ;;  %v879_v18 = vpack.c.bf16 %v401_v15, %v399_v13  ;;  %v310_v21 = vld [vmem:[%s259_s27] sm:$0xff]  ;;  %s688_s14 = sshll.u32 %s305_s23, 4  ;;  %s1491_s6 = scalar_lea.hbm %s1544_s4, %s834_s21  ;;  %s1493_s14 = int_to_ptr.vmem [resolvable:$true] %s688_s14 }
  0xa0   : > { %876 = vmatpush1.bf16.msra.mxu1 %v875_v9  ;;  %869 = vmatpush3.bf16.msra.mxu0 %v868_v10  ;;  %v871_v19 = vpack.c.bf16 %v314_v17, %v313_v16  ;;  %v394_v20 = vld [vmem:[%s268_s26] sm:$0xff]  ;;  %s674_s13 = scalar_lea.sflag [#allocation8], %s1447_s2  ;;  %s1102_s3 = scalar_lea.vmem %s1493_s14, 128 }
  0xa1   : > { %878 = vmatprep.subr.bf16.mxu1 %v877_v14  ;;  %870 = vmatprep.subr.bf16.mxu0 %v1206_v0  ;;  %p1103_p1 = scmp.ne.s32.totalorder %s1493_s14, %s1102_s3  ;;  %p1568_p6 = scmp.ne.s32.totalorder %s1560_s29, 0 }
  0xa2   : > { %s1211_s18 = smov [#allocation14]  }
  0xa3   : > { %p1104_p10 = pnand %p1103_p1, %p1568_p6  ;;  %s1106_s30 = sshll.u32 %s1211_s18, 4  ;;  %s1107_s30 = int_to_ptr.vmem [resolvable:$false] %s1106_s30 }
  0xa4   : > { %880 = vmatpush1.bf16.msra.mxu1 %v879_v18  ;;  %872 = vmatpush3.bf16.msra.mxu0 %v871_v19  ;;  %v549_v31 = vld [vmem:[#allocation3] sm:$0xff]  ;;  %s1108_s10 = scalar_lea.vmem %s1107_s30, 256  ;;  %p1109_p4 = scmp.lt.s32.totalorder %s1493_s14, %s1107_s30 }
  0xa5   : > { %857 = vmatprep.subr.mxu0 %v1207_v1  ;;  %862 = vmatprep.subr.mxu1 %v1207_v1  ;;  %v566_v42 = vld [vmem:[#allocation4] sm:$0xff]  ;;  %p1105_p3 = pneg %p1104_p10  ;;  %p1110_p9 = scmp.lt.s32.totalorder %s1108_s10, %s1102_s3 }
  0xa7   : > { %831 = vmatmul.mubr.msk.f32.vlgmr.msra.gmra.mrb[0].mxu1 %vm315_vm1, %v394_v20  ;;  %855 = vmatmul.mubr.msk.f32.vlgmr.msra.gmra.mrb[0].mxu0 %vm315_vm1, %v310_v21  ;;  %p1111_p5 = por %p1110_p9, %p1109_p4 }
  0xa8   : > { %859 = vmatprep.mubr.msk.f32.mxu0 %vm1208_vm0, %v1207_v1  ;;  %864 = vmatprep.mubr.msk.f32.mxu1 %vm1208_vm0, %v1207_v1 }
  0xa9   : > { %p1112_p7 = pnand %p1111_p5, %p1105_p3 }
 0x17a   : > { %v473_v22 = vpop.f32.mrb[0].mxu1  ;;  %v385_v23 = vpop.f32.mrb[0].mxu0 }
 0x17b   : > { %v475_v24 = vpop.f32.mrb[1].mxu1  ;;  %858 = vmatpush3.xpose.msra.mxu0 %v473_v22  ;;  %v856_v25 = vpop.f32.mrb[1].mxu0 }
 0x17c   : > { %863 = vmatpush3.msra.mxu1 %v475_v24 }
 0x17e   : > { %860 = vmatmul.mubr.f32.vlgmr.msra.gmra.mrb[2].mxu0 %v385_v23 }
 0x251   : > { %v545_v27 = vpop.f32.mrb[2].mxu0 }
 0x252   : > { %v861_v28 = vpop.f32.mrb[3].mxu0  ;;  %v551_v29 = vsel %vm550_vm3, %v545_v27, -inf }
 0x253   : > { %552 = vmax.xlane.f32.xlu0 %v551_v29 }
 0x2e0   : > { %v553_v32 = vpop.xlane.xlu0 %552 }
 0x2e1   : > { %v554_v33 = vmax.f32 %v549_v31, %v553_v32 }
 0x2e3   : > { %v555_v34 = vsub.f32 %v549_v31, %v554_v33  ;;  %656 = vst.msk [vmem:[#allocation3] sm:$0xff] %vm390_vm2, %v554_v33  ;;  %560 = vperm.xlu0 %978, %v554_v33  }
 0x2e5   : > { %v556_v40 = vmul.f32 1.442695, %v555_v34 }
 0x362   : > { %v561_v35 = vpop.permute.xlu0 %560 }
 0x363   : > { %v563_v36 = vsub.f32 %v545_v27, %v561_v35 }
 0x365   : > { %v564_v37 = vmul.f32 1.442695, %v563_v36 }
 0x367   : > { %980 = vpow2.f32 %v564_v37 }
 0x368   : > { %982 = vpow2.f32 %v556_v40 }
 0x371   : > { %v981_v38 = vpop.eup %980 }
 0x372   : > { %865 = vmatmul.mubr.msk.f32.vlgmr.msra.gmra.mrb[2].mxu1 %vm550_vm3, %v981_v38  ;;  %v568_v39 = vsel %vm550_vm3, %v981_v38, 0.0  ;;  %v983_v41 = vpop.eup %982 }
 0x373   : > { %569 = vadd.xlane.f32.xlu1 %v568_v39  ;;  %v567_v43 = vmul.f32 %v983_v41, %v566_v42 }
 0x384   : > { %577 = vperm.xlu1 %979, %v983_v41  }
 0x400   : > { %v570_v44 = vpop.xlane.xlu1 %569 }
 0x401   : > { %v571_v45 = vadd.f32 %v570_v44, %v567_v43 }
 0x403   : > { %573 = vst.msk [vmem:[#allocation4] sm:$0xff] %vm390_vm2, %v571_v45 }
 0x404   : > { %v578_v53 = vpop.permute.xlu1 %577 }
 0x405   : > { %v580_v54 = vmul.f32 0.0, %v578_v53 }
 0x40a   : > { %v660_v46 = vld [vmem:[#allocation4] sm:$0xff] }
 0x40b   : > { %984 = vrcp.f32 %v660_v46 }
 0x415   : > { %v985_v47 = vpop.eup %984 }
 0x416   : > { %v662_v48 = vmul.f32 %v985_v47, %v660_v46 }
 0x418   : > { %v663_v49 = vsub.f32 2.0, %v662_v48 }
 0x41a   : > { %v664_v50 = vmul.f32 %v985_v47, %v663_v49 }
 0x41c   : > { %668 = vperm.xlu1 %979, %v664_v50  }
 0x445   : > { %v650_v51 = vpop.f32.mrb[2].mxu1 }
 0x446   : > { %v866_v52 = vpop.f32.mrb[3].mxu1  ;;  %v654_v55 = vadd.f32 %v650_v51, %v580_v54 }
 0x49b   : > { %v669_v56 = vpop.permute.xlu1 %668 }
 0x49c   : > { %v671_v57 = vmul.f32 %v669_v56, %v654_v55 }
 0x49e   : > { %672 = vst [vmem:[%s305_s23] sm:$0xff] %v671_v57 }
 0x49f   : > { %1115 = shalt.err (!%p1112_p7)
}
 0x4a0   : > { %s1116_s11 = scalar_lea.hbm %s1491_s6, 128  ;;  %s1120_s22 = scalar_lea.hbm %s1544_s4, 256 }
 0x4a1   : > { %p1117_p13 = scmp.ne.s32.totalorder %s1491_s6, %s1116_s11  ;;  %p1121_p2 = scmp.lt.u32.totalorder %s1491_s6, %s1544_s4 }
 0x4a2   : > { %p1122_p12 = scmp.lt.u32.totalorder %s1120_s22, %s1116_s11  ;;  %p1124_p1 = scmp.lt.u32.totalorder %s1116_s11, %s1491_s6 }
 0x4a3   : > { %p1118_p8 = pnand %p1117_p13, %p1568_p6 }
 0x4a4   : > { %p1123_p0 = por %p1122_p12, %p1121_p2 }
 0x4a5   : > { %p1119_p11 = pneg %p1118_p8 }
 0x4a6   : > { %p1125_p10 = por %p1124_p1, %p1123_p0 }
 0x4a8   : > { %p1126_p3 = pnand %p1125_p10, %p1119_p11 }
 0x4aa   : > { %1129 = shalt.err (!%p1126_p3)
}
 0x4ab   : > { %893 = dma.vmem_to_hbm [thread:$0]  (%p1568_p6), %s1493_s14, 128, %s1491_s6, %s674_s13  }
 0x4ac PF: > { %s700_s25 = sand.u32 1, %s1176_s15   ;;  %p1569_p4 = scmp.ne.s32.totalorder %s1553_s24, 0 }
 0x4ad   : > { %p1570_p9 = scmp.ge.s32.totalorder %s1196_s20, 2  ;;  %s701_s12 = scalar_lea.sflag [#allocation8], %s700_s25 }
 0x4af   : > { %p910_p5 = pnand %p1570_p9, %p1569_p4 }
 0x4b1   : > { %1171 = dma.done.wait (!%p910_p5), %s701_s12, 128  }
 0x4b2   : > { %1173 = vsyncadd (!%p910_p5), %s701_s12, 4294967168  ;;  %s24_s20 = sadd.s32 1, %s1196_s20   ;;  %s1571_s29 = sld [smem:[#allocation20_spill]] }
 0x4b3   : > { %p21_p7 = scmp.ge.s32.totalorder %s24_s20, 4   ;;  %s1572_s15 = smov %s1180_s16 }
 0x4b4   : > { %s1573_s16 = smov %s1184_s17  ;;  %s1574_s17 = smov %s1377_s7 }
 0x4b5   : > { %s1575_s18 = smov %s1192_s19  ;;  %23 = sbr.rel (!%p21_p7) target bundleno = 12 (0xc), region = 110 }
 0x4b8   : > { %s1576_s19 = smov %s1571_s29 }
 0x4bc   :  { %706 = vsyncpa [#allocation7], 1 }
 0x4bd   :  { %708 = vsyncpa [#allocation7 + $0x1], 1 }
 0x4be   :  { %709 = vsyncpa [#allocation10], 1 }
 0x4bf   :  { %711 = vsyncpa [#allocation10 + $0x1], 1 }
 0x4c0   :  { %712 = vsyncpa [#allocation13], 1 }
 0x4c1   :  { %713 = vsyncpa [#allocation8], 1 }
 0x4c2   :  { %715 = vsyncpa [#allocation8 + $0x1], 1 }

</bundles_post_ra>
